<compile_context>
chip_gen: v7x
topology: tpu7x:2x2x1
jax: 0.10.0
libtpu: 0.0.40
codegen_flags: <defaults>
</compile_context>

<pallas_src>
import jax
import jax.numpy as jnp
from jax.experimental import pallas as pl
from jax.experimental.pallas import tpu as pltpu


# ----------------------------------------------------------------------------
# Kernels
# ----------------------------------------------------------------------------
def _critic_kernel_fused(s_ref, a_ref,
                         ws_ref, wa_ref, b1_ref,
                         w2_ref, b2_ref,
                         w3_ref, b3_ref,
                         q_ref):
    """Twin-Q forward with block-diagonal layer 2/3 (hidden_dim < 128)."""
    wdt = ws_ref.dtype  # compute dtype of the packed weights (f32 or bf16)

    # Layer 1 (fused Q1/Q2): split-K matmul replaces the host-side concat.
    #   cat(state, action) @ [W1 || W4]  ==  state @ Ws + action @ Wa
    h = jnp.dot(s_ref[...].astype(wdt), ws_ref[...],
                preferred_element_type=jnp.float32)
    h = h + jnp.dot(a_ref[...].astype(wdt), wa_ref[...],
                    preferred_element_type=jnp.float32)
    h = jnp.maximum(h + b1_ref[...], 0.0)

    # Layer 2 (block-diag [[W2,0],[0,W5]]): both branches in one MXU dot.
    h = jnp.dot(h.astype(wdt), w2_ref[...],
                preferred_element_type=jnp.float32) + b2_ref[...]
    h = jnp.maximum(h, 0.0)

    # Layer 3 (block-diag [[W3,0],[0,W6]]): output columns are [q1, q2].
    q = jnp.dot(h.astype(wdt), w3_ref[...],
                preferred_element_type=jnp.float32) + b3_ref[...]
    q_ref[...] = q.astype(q_ref.dtype)


def _critic_kernel_split(s_ref, a_ref,
                         ws_ref, wa_ref, b1_ref,
                         w2a_ref, w2b_ref, b2_ref,
                         w3_ref, b3_ref,
                         q_ref):
    """Twin-Q forward with layer 2 split per branch (hidden_dim >= 128).

    Avoids doubling MACs/weight bytes that a (2H,2H) block-diag would cost
    once H no longer fits a single MXU tile.  Layer 3 stays block-diag (2H,2)
    -- its cost is negligible and it directly yields the [q1, q2] lanes.
    """
    wdt = ws_ref.dtype
    H = w2a_ref.shape[0]

    h = jnp.dot(s_ref[...].astype(wdt), ws_ref[...],
                preferred_element_type=jnp.float32)
    h = h + jnp.dot(a_ref[...].astype(wdt), wa_ref[...],
                    preferred_element_type=jnp.float32)
    h = jnp.maximum(h + b1_ref[...], 0.0)          # (TB, 2H)

    g1 = jnp.dot(h[:, :H].astype(wdt), w2a_ref[...],
                 preferred_element_type=jnp.float32)
    g2 = jnp.dot(h[:, H:].astype(wdt), w2b_ref[...],
                 preferred_element_type=jnp.float32)
    g = jnp.maximum(jnp.concatenate([g1, g2], axis=1) + b2_ref[...], 0.0)

    q = jnp.dot(g.astype(wdt), w3_ref[...],
                preferred_element_type=jnp.float32) + b3_ref[...]
    q_ref[...] = q.astype(q_ref.dtype)


# ----------------------------------------------------------------------------
# Wrapper
# ----------------------------------------------------------------------------
def _round_up(x, m):
    return ((x + m - 1) // m) * m


def _pick_batch_tile(B):
    # Per-grid-step overhead (~0.35 us) dwarfs the per-row work, so use big
    # tiles.  For large B, keep >= 2 steps so the "parallel" axis can shard
    # across both v7x TensorCores; cap at 2048 rows (VMEM has >10x headroom).
    if B <= 1024:
        return B                                    # single step, full block
    return min(2048, _round_up(-(-B // 2), 8))      # >=2 steps, multiple of 8


@jax.jit
def critic_forward(state, action, packed):
    """Fused twin-Q forward.  Returns (q1, q2), each (B, 1) float32."""
    B, S = state.shape
    A = action.shape[1]
    H2 = packed["b1"].shape[1]          # 2 * hidden_dim
    H = H2 // 2
    fused_l2 = "w2" in packed           # packing decided block-diag vs split

    TB = _pick_batch_tile(B)
    grid = (pl.cdiv(B, TB),)

    def resident(arr):                  # weights: full block, constant index
        nd = arr.ndim
        return pl.BlockSpec(arr.shape, lambda i, nd=nd: (0,) * nd)

    if fused_l2:
        kernel = _critic_kernel_fused
        weight_keys = ("ws", "wa", "b1", "w2", "b2", "w3", "b3")
        l2_flops = 2 * B * H2 * H2
    else:
        kernel = _critic_kernel_split
        weight_keys = ("ws", "wa", "b1", "w2a", "w2b", "b2", "w3", "b3")
        l2_flops = 2 * (2 * B * H * H)
    weights = [packed[k] for k in weight_keys]

    in_specs = [pl.BlockSpec((TB, S), lambda i: (i, 0)),   # state  (batch-tiled)
                pl.BlockSpec((TB, A), lambda i: (i, 0))]   # action (batch-tiled)
    in_specs += [resident(w) for w in weights]
    out_specs = pl.BlockSpec((TB, 2), lambda i: (i, 0))

    flops = 2 * B * (S + A) * H2 + l2_flops + 2 * B * H2 * 2
    bytes_accessed = (state.size * state.dtype.itemsize
                      + action.size * action.dtype.itemsize
                      + sum(w.size * w.dtype.itemsize for w in weights)
                      + B * 2 * 4)
    cost = pl.CostEstimate(flops=flops, transcendentals=0,
                           bytes_accessed=bytes_accessed)

    q12 = pl.pallas_call(
        kernel,
        out_shape=jax.ShapeDtypeStruct((B, 2), jnp.float32),
        grid=grid,
        in_specs=in_specs,
        out_specs=out_specs,
        compiler_params=pltpu.CompilerParams(
            dimension_semantics=("parallel",)),
        cost_estimate=cost,
    )(state, action, *weights)

    # Lane-merged output -> split into the module's (q1, q2) API.
    # TODO(synk): for the training path, fuse consumers (e.g. min(q1,q2) / TD
    # error) into the kernel or consume q12 directly instead of slicing here.
    return q12[:, 0:1], q12[:, 1:2]


# ----------------------------------------------------------------------------
# Parameter init (matches PyTorch Critic) and one-time packing
# ----------------------------------------------------------------------------
def _xavier_uniform(key, fan_in, fan_out, dtype=jnp.float32):
    # Matches torch.nn.init.xavier_uniform_ (gain=1); stored as (in, out),
    # i.e. the transpose of PyTorch's (out, in) weight.
    limit = (6.0 / (fan_in + fan_out)) ** 0.5
    return jax.random.uniform(key, (fan_in, fan_out), dtype,
                              minval=-limit, maxval=limit)


def init_critic_params(key, state_size, action_size, hidden_dim):
    sa = state_size + action_size
    ks = jax.random.split(key, 6)
    return {
        "w1": _xavier_uniform(ks[0], sa, hidden_dim),
        "b1": jnp.zeros((1, hidden_dim), jnp.float32),
        "w2": _xavier_uniform(ks[1], hidden_dim, hidden_dim),
        "b2": jnp.zeros((1, hidden_dim), jnp.float32),
        "w3": _xavier_uniform(ks[2], hidden_dim, 1),
        "b3": jnp.zeros((1, 1), jnp.float32),
        "w4": _xavier_uniform(ks[3], sa, hidden_dim),
        "b4": jnp.zeros((1, hidden_dim), jnp.float32),
        "w5": _xavier_uniform(ks[4], hidden_dim, hidden_dim),
        "b5": jnp.zeros((1, hidden_dim), jnp.float32),
        "w6": _xavier_uniform(ks[5], hidden_dim, 1),
        "b6": jnp.zeros((1, 1), jnp.float32),
    }


def pack_critic_params(p, state_size, compute_dtype=jnp.float32):
    """Pack per-layer params into the fused twin-branch layout (done once).

    compute_dtype: dtype of the packed matmul weights (use jnp.bfloat16 on
    v6e/v7x to cut f32 MXU emulation passes; biases stay f32 and accumulation
    is always f32).
    """
    H = p["w1"].shape[1]
    cd = compute_dtype

    # Layer 1: [W1 || W4], split into state rows / action rows.
    ws = jnp.concatenate([p["w1"][:state_size], p["w4"][:state_size]], axis=1)  # (S, 2H)
    wa = jnp.concatenate([p["w1"][state_size:], p["w4"][state_size:]], axis=1)  # (A, 2H)
    b1 = jnp.concatenate([p["b1"], p["b4"]], axis=1)                            # (1, 2H)
    b2 = jnp.concatenate([p["b2"], p["b5"]], axis=1)                            # (1, 2H)

    # Layer 3: block-diag [[W3, 0], [0, W6]] -> columns [q1, q2] (tiny).
    z1 = jnp.zeros((H, 1), p["w3"].dtype)
    w3 = jnp.block([[p["w3"], z1], [z1, p["w6"]]])                              # (2H, 2)
    b3 = jnp.concatenate([p["b3"], p["b6"]], axis=1)                            # (1, 2)

    packed = {"ws": ws.astype(cd), "wa": wa.astype(cd), "b1": b1,
              "b2": b2, "w3": w3.astype(cd), "b3": b3}

    if H < 128:
        # Block-diag layer 2 is free while 2H fits one MXU tile.
        zH = jnp.zeros((H, H), p["w2"].dtype)
        w2 = jnp.block([[p["w2"], zH], [zH, p["w5"]]])                          # (2H, 2H)
        packed["w2"] = w2.astype(cd)
    else:
        # Scaling guard: at H >= 128 block-diag would double MACs/weight bytes.
        packed["w2a"] = p["w2"].astype(cd)
        packed["w2b"] = p["w5"].astype(cd)
    return packed


# ----------------------------------------------------------------------------
# Pure-JAX reference (original unfused math) for correctness checking
# ----------------------------------------------------------------------------
def critic_forward_ref(state, action, params):
    hp = jax.lax.Precision.HIGHEST
    sa = jnp.concatenate([state, action], axis=1)
    h = jax.nn.relu(jnp.dot(sa, params["w1"], precision=hp) + params["b1"])
    h = jax.nn.relu(jnp.dot(h, params["w2"], precision=hp) + params["b2"])
    q1 = jnp.dot(h, params["w3"], precision=hp) + params["b3"]
    g = jax.nn.relu(jnp.dot(sa, params["w4"], precision=hp) + params["b4"])
    g = jax.nn.relu(jnp.dot(g, params["w5"], precision=hp) + params["b5"])
    q2 = jnp.dot(g, params["w6"], precision=hp) + params["b6"]
    return q1, q2


if __name__ == "__main__":
    state_size, action_size, hidden_dim = 12, 4, 32
    batch = 8

    key = jax.random.PRNGKey(0)
    k_params, k_state, k_action, k_params2 = jax.random.split(key, 4)

    params = init_critic_params(k_params, state_size, action_size, hidden_dim)
    packed = pack_critic_params(params, state_size)

    state = jax.random.normal(k_state, (batch, state_size), jnp.float32)
    action = jax.random.normal(k_action, (batch, action_size), jnp.float32)

    # 1) Small batch, f32, fused block-diag path (exact).
    q1, q2 = critic_forward(state, action, packed)
    jax.block_until_ready((q1, q2))
    q1_ref, q2_ref = critic_forward_ref(state, action, params)
    assert q1.shape == (batch, 1) and q2.shape == (batch, 1)
    assert jnp.allclose(q1, q1_ref, atol=1e-5, rtol=1e-5)
    assert jnp.allclose(q2, q2_ref, atol=1e-5, rtol=1e-5)

    # 2) Large ragged batch -> multi-step "parallel" grid with masked tail.
    B = 3000
    sb = jax.random.normal(jax.random.PRNGKey(1), (B, state_size), jnp.float32)
    ab = jax.random.normal(jax.random.PRNGKey(2), (B, action_size), jnp.float32)
    q1b, q2b = critic_forward(sb, ab, packed)
    jax.block_until_ready((q1b, q2b))
    q1b_ref, q2b_ref = critic_forward_ref(sb, ab, params)
    assert jnp.allclose(q1b, q1b_ref, atol=1e-4, rtol=1e-4)
    assert jnp.allclose(q2b, q2b_ref, atol=1e-4, rtol=1e-4)

    # 3) bf16 weight/operand path (v6e/v7x MXU-native); f32 accumulation,
    #    so ~1e-3..1e-2 relative error is expected -> looser tolerance.
    packed_bf16 = pack_critic_params(params, state_size,
                                     compute_dtype=jnp.bfloat16)
    q1h, q2h = critic_forward(state, action, packed_bf16)
    jax.block_until_ready((q1h, q2h))
    assert jnp.allclose(q1h, q1_ref, atol=2e-1, rtol=5e-2)
    assert jnp.allclose(q2h, q2_ref, atol=2e-1, rtol=5e-2)

    # 4) hidden_dim >= 128 -> split layer-2 path (scaling guard), f32 exact.
    params_big = init_critic_params(k_params2, state_size, action_size, 128)
    packed_big = pack_critic_params(params_big, state_size)
    q1g, q2g = critic_forward(state, action, packed_big)
    jax.block_until_ready((q1g, q2g))
    q1g_ref, q2g_ref = critic_forward_ref(state, action, params_big)
    assert jnp.allclose(q1g, q1g_ref, atol=1e-4, rtol=1e-4)
    assert jnp.allclose(q2g, q2g_ref, atol=1e-4, rtol=1e-4)

    print("KERNEL_OK")
</pallas_src>

<mosaic_0001>
module attributes {stable_mosaic.version = 11 : i64} {
  func.func @_critic_kernel_fused(%arg0: i32, %arg1: memref<8x12xf32, #tpu.memory_space<vmem>>, %arg2: memref<8x4xf32, #tpu.memory_space<vmem>>, %arg3: memref<12x64xf32, #tpu.memory_space<vmem>>, %arg4: memref<4x64xf32, #tpu.memory_space<vmem>>, %arg5: memref<1x64xf32, #tpu.memory_space<vmem>>, %arg6: memref<64x64xf32, #tpu.memory_space<vmem>>, %arg7: memref<1x64xf32, #tpu.memory_space<vmem>>, %arg8: memref<64x2xf32, #tpu.memory_space<vmem>>, %arg9: memref<1x2xf32, #tpu.memory_space<vmem>>, %arg10: memref<8x2xf32, #tpu.memory_space<vmem>>) attributes {dimension_semantics = [#tpu.dimension_semantics<parallel>], iteration_bounds = array<i64: 1>, scalar_prefetch = 0 : i64, scratch_operands = 0 : i64, tpu.core_type = #tpu.core_type<tc>, window_params = [{transform_indices = @transform_0, window_bounds = array<i64: 8, 12>}, {transform_indices = @transform_1, window_bounds = array<i64: 8, 4>}, {pipeline_mode = #tpu.pipeline_mode<synchronous>, transform_indices = @transform_2, window_bounds = array<i64: 12, 64>}, {pipeline_mode = #tpu.pipeline_mode<synchronous>, transform_indices = @transform_3, window_bounds = array<i64: 4, 64>}, {pipeline_mode = #tpu.pipeline_mode<synchronous>, transform_indices = @transform_4, window_bounds = array<i64: 1, 64>}, {pipeline_mode = #tpu.pipeline_mode<synchronous>, transform_indices = @transform_5, window_bounds = array<i64: 64, 64>}, {pipeline_mode = #tpu.pipeline_mode<synchronous>, transform_indices = @transform_6, window_bounds = array<i64: 1, 64>}, {pipeline_mode = #tpu.pipeline_mode<synchronous>, transform_indices = @transform_7, window_bounds = array<i64: 64, 2>}, {pipeline_mode = #tpu.pipeline_mode<synchronous>, transform_indices = @transform_8, window_bounds = array<i64: 1, 2>}, {transform_indices = @transform_9, window_bounds = array<i64: 8, 2>}]} {
    %c0 = arith.constant 0 : index
    %c0_0 = arith.constant 0 : index
    %0 = vector.load %arg1[%c0, %c0_0] : memref<8x12xf32, #tpu.memory_space<vmem>>, vector<8x12xf32>
    %c0_1 = arith.constant 0 : index
    %c0_2 = arith.constant 0 : index
    %1 = vector.load %arg3[%c0_1, %c0_2] : memref<12x64xf32, #tpu.memory_space<vmem>>, vector<12x64xf32>
    %cst = arith.constant dense<0.000000e+00> : vector<8x64xf32>
    %2 = tpu.matmul %0, %1, %cst {dimension_numbers = #tpu.dot_dimension_numbers<[1], [0], [0], [1], [0, 0, 1, 1], [], []>} : vector<8x12xf32>, vector<12x64xf32>, vector<8x64xf32> -> vector<8x64xf32>
    %c0_3 = arith.constant 0 : index
    %c0_4 = arith.constant 0 : index
    %3 = vector.load %arg2[%c0_3, %c0_4] : memref<8x4xf32, #tpu.memory_space<vmem>>, vector<8x4xf32>
    %c0_5 = arith.constant 0 : index
    %c0_6 = arith.constant 0 : index
    %4 = vector.load %arg4[%c0_5, %c0_6] : memref<4x64xf32, #tpu.memory_space<vmem>>, vector<4x64xf32>
    %cst_7 = arith.constant dense<0.000000e+00> : vector<8x64xf32>
    %5 = tpu.matmul %3, %4, %cst_7 {dimension_numbers = #tpu.dot_dimension_numbers<[1], [0], [0], [1], [0, 0, 1, 1], [], []>} : vector<8x4xf32>, vector<4x64xf32>, vector<8x64xf32> -> vector<8x64xf32>
    %6 = arith.addf %2, %5 : vector<8x64xf32>
    %c0_8 = arith.constant 0 : index
    %c0_9 = arith.constant 0 : index
    %7 = vector.load %arg5[%c0_8, %c0_9] : memref<1x64xf32, #tpu.memory_space<vmem>>, vector<1x64xf32>
    %8 = vector.broadcast %7 : vector<1x64xf32> to vector<8x64xf32>
    %9 = arith.addf %6, %8 : vector<8x64xf32>
    %cst_10 = arith.constant 0.000000e+00 : f32
    %10 = vector.broadcast %cst_10 : f32 to vector<8x64xf32>
    %11 = arith.maximumf %9, %10 : vector<8x64xf32>
    %c0_11 = arith.constant 0 : index
    %c0_12 = arith.constant 0 : index
    %12 = vector.load %arg6[%c0_11, %c0_12] : memref<64x64xf32, #tpu.memory_space<vmem>>, vector<64x64xf32>
    %cst_13 = arith.constant dense<0.000000e+00> : vector<8x64xf32>
    %13 = tpu.matmul %11, %12, %cst_13 {dimension_numbers = #tpu.dot_dimension_numbers<[1], [0], [0], [1], [0, 0, 1, 1], [], []>} : vector<8x64xf32>, vector<64x64xf32>, vector<8x64xf32> -> vector<8x64xf32>
    %c0_14 = arith.constant 0 : index
    %c0_15 = arith.constant 0 : index
    %14 = vector.load %arg7[%c0_14, %c0_15] : memref<1x64xf32, #tpu.memory_space<vmem>>, vector<1x64xf32>
    %15 = vector.broadcast %14 : vector<1x64xf32> to vector<8x64xf32>
    %16 = arith.addf %13, %15 : vector<8x64xf32>
    %cst_16 = arith.constant 0.000000e+00 : f32
    %17 = vector.broadcast %cst_16 : f32 to vector<8x64xf32>
    %18 = arith.maximumf %16, %17 : vector<8x64xf32>
    %c0_17 = arith.constant 0 : index
    %c0_18 = arith.constant 0 : index
    %19 = vector.load %arg8[%c0_17, %c0_18] : memref<64x2xf32, #tpu.memory_space<vmem>>, vector<64x2xf32>
    %cst_19 = arith.constant dense<0.000000e+00> : vector<8x2xf32>
    %20 = tpu.matmul %18, %19, %cst_19 {dimension_numbers = #tpu.dot_dimension_numbers<[1], [0], [0], [1], [0, 0, 1, 1], [], []>} : vector<8x64xf32>, vector<64x2xf32>, vector<8x2xf32> -> vector<8x2xf32>
    %c0_20 = arith.constant 0 : index
    %c0_21 = arith.constant 0 : index
    %21 = vector.load %arg9[%c0_20, %c0_21] : memref<1x2xf32, #tpu.memory_space<vmem>>, vector<1x2xf32>
    %22 = vector.broadcast %21 : vector<1x2xf32> to vector<8x2xf32>
    %23 = arith.addf %20, %22 : vector<8x2xf32>
    %c0_22 = arith.constant 0 : index
    %c0_23 = arith.constant 0 : index
    %24 = vector.load %arg10[%c0_22, %c0_23] : memref<8x2xf32, #tpu.memory_space<vmem>>, vector<8x2xf32>
    tpu.vector_store %arg10[%c0_22, %c0_23], %23 {strides = array<i32>} : memref<8x2xf32, #tpu.memory_space<vmem>>, vector<8x2xf32>,
    return
  }
  func.func @transform_0(%arg0: i32) -> (i32, i32) {
    %c0_i32 = arith.constant 0 : i32
    %c0_i32_0 = arith.constant 0 : i32
    return %arg0, %c0_i32 : i32, i32
  }
  func.func @transform_1(%arg0: i32) -> (i32, i32) {
    %c0_i32 = arith.constant 0 : i32
    %c0_i32_0 = arith.constant 0 : i32
    return %arg0, %c0_i32 : i32, i32
  }
  func.func @transform_2(%arg0: i32) -> (i32, i32) {
    %c0_i32 = arith.constant 0 : i32
    %c0_i32_0 = arith.constant 0 : i32
    %c0_i32_1 = arith.constant 0 : i32
    return %c0_i32, %c0_i32_0 : i32, i32
  }
  func.func @transform_3(%arg0: i32) -> (i32, i32) {
    %c0_i32 = arith.constant 0 : i32
    %c0_i32_0 = arith.constant 0 : i32
    %c0_i32_1 = arith.constant 0 : i32
    return %c0_i32, %c0_i32_0 : i32, i32
  }
  func.func @transform_4(%arg0: i32) -> (i32, i32) {
    %c0_i32 = arith.constant 0 : i32
    %c0_i32_0 = arith.constant 0 : i32
    %c0_i32_1 = arith.constant 0 : i32
    return %c0_i32, %c0_i32_0 : i32, i32
  }
  func.func @transform_5(%arg0: i32) -> (i32, i32) {
    %c0_i32 = arith.constant 0 : i32
    %c0_i32_0 = arith.constant 0 : i32
    %c0_i32_1 = arith.constant 0 : i32
    return %c0_i32, %c0_i32_0 : i32, i32
  }
  func.func @transform_6(%arg0: i32) -> (i32, i32) {
    %c0_i32 = arith.constant 0 : i32
    %c0_i32_0 = arith.constant 0 : i32
    %c0_i32_1 = arith.constant 0 : i32
    return %c0_i32, %c0_i32_0 : i32, i32
  }
  func.func @transform_7(%arg0: i32) -> (i32, i32) {
    %c0_i32 = arith.constant 0 : i32
    %c0_i32_0 = arith.constant 0 : i32
    %c0_i32_1 = arith.constant 0 : i32
    return %c0_i32, %c0_i32_0 : i32, i32
  }
  func.func @transform_8(%arg0: i32) -> (i32, i32) {
    %c0_i32 = arith.constant 0 : i32
    %c0_i32_0 = arith.constant 0 : i32
    %c0_i32_1 = arith.constant 0 : i32
    return %c0_i32, %c0_i32_0 : i32, i32
  }
  func.func @transform_9(%arg0: i32) -> (i32, i32) {
    %c0_i32 = arith.constant 0 : i32
    %c0_i32_0 = arith.constant 0 : i32
    return %arg0, %c0_i32 : i32, i32
  }
}

</mosaic_0001>

<bundles_post_ra>
// kernel: critic_forward.1
= control target key start
LH: loop header
LB: loop body
LE: loop exit
PB: predicated region body
PF: predicated region fallthrough
CT: control target
= control target key end

     0   :  { %vm41_vm0 = vcmask 1043456   ;;  %v499_v0 = vmov 0.0|0.0   ;;  %v500_v1 = vmov 0.0   ;;  %vm501_vm1 = vmmov 1   ;;  %s634_s2 = inlined_call_operand.vmem [shape: f32[12,64], index: 2, kind: input, shape index: {}]   ;;  %s635_s3 = inlined_call_operand.vmem [shape: f32[4,64], index: 3, kind: input, shape index: {}]   ;;  %s636_s1 = inlined_call_operand.vmem [shape: f32[8,4], index: 1, kind: input, shape index: {}]   ;;  %s637_s5 = inlined_call_operand.vmem [shape: f32[64,64], index: 5, kind: input, shape index: {}]   ;;  %s638_s0 = inlined_call_operand.vmem [shape: f32[8,12], index: 0, kind: input, shape index: {}]   ;;  %s639_s7 = inlined_call_operand.vmem [shape: f32[64,2], index: 7, kind: input, shape index: {}]   ;;  %s640_s4 = inlined_call_operand.vmem [shape: f32[1,64], index: 4, kind: input, shape index: {}]   ;;  %s641_s6 = inlined_call_operand.vmem [shape: f32[1,64], index: 6, kind: input, shape index: {}]   ;;  %s642_s8 = inlined_call_operand.vmem [shape: f32[1,2], index: 8, kind: input, shape index: {}]   ;;  %s643_s9 = inlined_call_operand.vmem [shape: f32[8,2], index: 9, kind: output, shape index: {}]  }
   0x1   :  { %467 = vmatprep.subr.bf16.mxu1 %v499_v0  ;;  %417 = vmatprep.subr.mxu0 %v500_v1  ;;  %v33_v2 = vld [vmem:[%s634_s2] sm:$0xff]  ;;  %v34_v3 = vld [vmem:[%s634_s2 + $0x8] sm:$0xf]  ;;  %vm469_vm2 = vmpackc.low %vm41_vm0, %vm501_vm1  ;;  %vm37_vm3 = vcmask 31744   ;;  %vm502_vm4 = vmmov 0   ;;  %vm115_vm5 = vcmask 97280  }
   0x2   :  { %v468_v4 = vpack.c.bf16 %v34_v3, %v33_v2  ;;  %v36_v5 = vld [vmem:[%s635_s3] sm:$0xf]  ;;  %419 = vmatprep.mubr.msk.f32.mxu0 %vm502_vm4, %v500_v1  ;;  %426 = vmatprep.mubr.msk.f32.mxu1 %vm502_vm4, %v500_v1  ;;  %v202_v8 = vld [vmem:[%s637_s5 + $0x8] sm:$0xff]  ;;  %v203_v9 = vld [vmem:[%s637_s5 + $0x10] sm:$0xff]  ;;  %vm216_vm6 = vcmask 523264   ;;  %vm379_vm7 = vcmask 15360  }
   0x3   :  { %v35_v6 = vld [vmem:[%s636_s1] sm:$0xff]  ;;  %418 = vmatpush3.msk.msra.mxu0 %vm41_vm0, %v36_v5  ;;  %v204_v12 = vld [vmem:[%s637_s5 + $0x18] sm:$0xff]  ;;  %v206_v15 = vld [vmem:[%s637_s5 + $0x28] sm:$0xff] }
   0x4   :  { %v201_v7 = vld [vmem:[%s637_s5] sm:$0xff]  ;;  %470 = vmatpush3.bf16.msk.msra.mxu1 %vm469_vm2, %v468_v4  ;;  %420 = vmatmul.mubr.msk.f32.vlgmr.msra.gmra.mrb[0].mxu0 %vm37_vm3, %v35_v6  ;;  %v475_v13 = vpack.c.bf16 %v204_v12, %v203_v9  ;;  %v207_v17 = vld [vmem:[%s637_s5 + $0x30] sm:$0xff]  ;;  %v208_v18 = vld [vmem:[%s637_s5 + $0x38] sm:$0xff] }
   0x5   :  { %v32_v10 = vld [vmem:[%s638_s0] sm:$0xff]  ;;  %v472_v11 = vpack.c.bf16 %v202_v8, %v201_v7  ;;  %471 = vmatprep.subr.bf16.mxu0 %v499_v0  ;;  %445 = vmatprep.mubr.msk.f32.mxu0 %vm502_vm4, %v500_v1  ;;  %v481_v19 = vpack.c.bf16 %v208_v18, %v207_v17  ;;  %v292_v21 = vld [vmem:[%s639_s7 + $0x8] sm:$0xff]  ;;  %v293_v22 = vld [vmem:[%s639_s7 + $0x10] sm:$0xff] }
   0x6   :  { %483 = vmatprep.subr.bf16.mxu1 %v499_v0  ;;  %v205_v14 = vld [vmem:[%s637_s5 + $0x20] sm:$0xff]  ;;  %v294_v24 = vld [vmem:[%s639_s7 + $0x18] sm:$0xff]  ;;  %v296_v27 = vld [vmem:[%s639_s7 + $0x28] sm:$0xff] }
   0x7   :  { %473 = vmatpush3.bf16.msra.mxu0 %v472_v11  ;;  %427 = vmatmul.mubr.msk.f32.vlgmr.msra.gmra.mrb[0].mxu1 %vm115_vm5, %v32_v10  ;;  %v478_v16 = vpack.c.bf16 %v206_v15, %v205_v14  ;;  %v291_v20 = vld [vmem:[%s639_s7] sm:$0xff]  ;;  %v487_v25 = vpack.c.bf16 %v294_v24, %v293_v22  ;;  %v297_v37 = vld [vmem:[%s639_s7 + $0x30] sm:$0xff]  ;;  %v298_v38 = vld [vmem:[%s639_s7 + $0x38] sm:$0xff] }
   0x8   :  { %474 = vmatprep.subr.bf16.mxu0 %v499_v0  ;;  %464 = vmatprep.mubr.msk.f32.mxu1 %vm502_vm4, %v500_v1  ;;  %v484_v23 = vpack.c.bf16 %v292_v21, %v291_v20  ;;  %v295_v26 = vld [vmem:[%s639_s7 + $0x20] sm:$0xff]  ;;  %v493_v39 = vpack.c.bf16 %v298_v38, %v297_v37 }
   0x9   :  { %v490_v28 = vpack.c.bf16 %v296_v27, %v295_v26  ;;  %v389_v32 = vld [vmem:[%s640_s4] ss:$0 sm:$0xff] }
   0xa   :  { %485 = vmatpush3.bf16.msra.mxu1 %v484_v23  ;;  %v390_v40 = vld [vmem:[%s641_s6] ss:$0 sm:$0xff] }
   0xb   :  { %476 = vmatpush3.bf16.msra.mxu0 %v475_v13  ;;  %486 = vmatprep.subr.bf16.mxu1 %v499_v0  ;;  %v392_v45 = vld [vmem:[%s642_s8] ss:$0 sm:$0xff] }
   0xc   :  { %477 = vmatprep.subr.bf16.mxu0 %v499_v0 }
   0xe   :  { %488 = vmatpush3.bf16.msra.mxu1 %v487_v25 }
   0xf   :  { %479 = vmatpush3.bf16.msra.mxu0 %v478_v16  ;;  %489 = vmatprep.subr.bf16.mxu1 %v499_v0 }
  0x10   :  { %480 = vmatprep.subr.bf16.mxu0 %v499_v0 }
  0x12   :  { %491 = vmatpush3.bf16.msra.mxu1 %v490_v28 }
  0x13   :  { %482 = vmatpush3.bf16.msra.mxu0 %v481_v19  ;;  %492 = vmatprep.subr.bf16.mxu1 %v499_v0 }
  0x16   :  { %494 = vmatpush3.bf16.msra.mxu1 %v493_v39 }
  0xd7   :  { %v111_v29 = vpop.f32.mrb[0].mxu0 }
  0xd8   :  { %v421_v30 = vpop.f32.mrb[1].mxu0 }
  0xda   :  { %v188_v31 = vpop.f32.mrb[0].mxu1 }
  0xdb   :  { %v189_v33 = vadd.f32 %v188_v31, %v111_v29  ;;  %v428_v34 = vpop.f32.mrb[1].mxu1 }
  0xdd   :  { %v199_v35 = vadd.f32 %v389_v32, %v189_v33 }
  0xdf   :  { %v200_v36 = vmax.f32 %v199_v35, 0.0 }
  0xe1   :  { %446 = vmatmul.mubr.msk.f32.vlgmr.msra.gmra.mrb[2].mxu0 %vm216_vm6, %v200_v36 }
 0x1b4   :  { %v286_v41 = vpop.f32.mrb[2].mxu0 }
 0x1b5   :  { %v287_v42 = vadd.f32 %v390_v40, %v286_v41  ;;  %v447_v43 = vpop.f32.mrb[3].mxu0 }
 0x1b7   :  { %v290_v44 = vmax.f32 %v287_v42, 0.0 }
 0x1b9   :  { %465 = vmatmul.mubr.msk.f32.vlgmr.msra.gmra.mrb[2].mxu1 %vm216_vm6, %v290_v44 }
 0x28c   :  { %v375_v46 = vpop.f32.mrb[2].mxu1 }
 0x28d   :  { %v376_v47 = vadd.f32 %v392_v45, %v375_v46  ;;  %v466_v48 = vpop.f32.mrb[3].mxu1 }
 0x28f   :  { %380 = vst.msk [vmem:[%s643_s9] sm:$0xff] %vm379_vm7, %v376_v47 }

</bundles_post_ra>
